<compile_context>
chip_gen: v7x
topology: tpu7x:2x2x1
jax: 0.10.0
libtpu: 0.0.40
codegen_flags: <defaults>
</compile_context>

<pallas_src>
import jax
import jax.numpy as jnp
from jax.experimental import pallas as pl
from jax.experimental.pallas import tpu as pltpu

HIDDEN = 64


def att2_kernel(x_ref, w1_ref, b1_ref, w2_ref, b2_ref, w3_ref, b3_ref, o_ref):
    # fc1 + relu: compute-dtype MXU matmul, f32 accumulation, f32 epilogue.
    h1 = jnp.dot(x_ref[...], w1_ref[...], preferred_element_type=jnp.float32)
    h1 = jnp.maximum(h1 + b1_ref[...], 0.0)                        # [TB, 64] f32
    # fc2 + relu
    h2 = jnp.dot(h1.astype(w2_ref.dtype), w2_ref[...],
                 preferred_element_type=jnp.float32)
    h2 = jnp.maximum(h2 + b2_ref[...], 0.0)                        # [TB, 64] f32
    # fc3 (out dim = 1): VPU broadcast-mul + lane reduce (kept in f32, XLU has slack).
    z = jnp.sum(h2 * w3_ref[...], axis=-1) + b3_ref[0, 0]          # [TB] f32
    # Exact sigmoid (exp on the EUP, exact divide) -- the approx reciprocal was the
    # source of the previous correctness failure.
    sig = 1.0 / (1.0 + jnp.exp(-z))
    # Sublane+lane dense output tile: (TB//128, 128), row-major over the batch.
    o_ref[...] = sig.reshape(o_ref.shape).astype(o_ref.dtype)


def _choose_tiling(B, din, in_bytes, *, tb=None, max_tb=8192,
                   x_stream_budget=12 * 1024 * 1024):
    """Pick (tb, grid, b_pad).

    tb is a multiple of 128, sized so the double-buffered streamed x tile stays
    inside a conservative VMEM budget (portable to v7x's 64 MiB VMEM), with >= 2
    grid steps whenever the batch allows it (v7x dual-TensorCore sharding), and
    rows balanced across the minimal step count to limit last-tile padding.
    """
    rows = max(128, pl.cdiv(B, 128) * 128)            # batch rounded to lane granule
    cap = (x_stream_budget // (2 * din * in_bytes)) // 128 * 128
    cap = int(max(128, min(cap, max_tb)))
    if tb is None:
        steps = pl.cdiv(rows, cap)                    # fewest steps within the cap
        if rows >= 256:
            steps = max(steps, 2)                     # keep both v7x TCs busy
        tb = pl.cdiv(pl.cdiv(rows, steps), 128) * 128
    else:
        tb = max(128, pl.cdiv(int(tb), 128) * 128)
        tb = min(tb, cap, rows)
    grid = pl.cdiv(rows, tb)
    return int(tb), int(grid), int(grid * tb)


def att2_forward(x, params, *, compute_dtype=jnp.bfloat16, tb=None,
                 max_tb=8192, vmem_limit_bytes=32 * 1024 * 1024):
    """sigmoid(relu(relu(x@W1+b1)@W2+b2)@W3+b3); x:[B,din] -> out:[B,1] (f32)."""
    w1, b1, w2, b2, w3, b3 = params
    B, din = x.shape

    # Defensive reshapes: PyTorch-style 1-D biases and a (64,1) fc3 weight are fine.
    b1 = jnp.asarray(b1, jnp.float32).reshape(1, HIDDEN)
    b2 = jnp.asarray(b2, jnp.float32).reshape(1, HIDDEN)
    w3_row = jnp.asarray(w3, jnp.float32).reshape(1, HIDDEN)       # f32 epilogue weight
    b3_s = jnp.asarray(b3, jnp.float32).reshape(1, 1)              # SMEM scalar

    # Matmul operands in the compute dtype (bf16 by default), f32 accumulation.
    xc = x.astype(compute_dtype)
    w1c = jnp.asarray(w1).reshape(din, HIDDEN).astype(compute_dtype)
    w2c = jnp.asarray(w2).reshape(HIDDEN, HIDDEN).astype(compute_dtype)

    in_bytes = jnp.dtype(compute_dtype).itemsize
    tb, grid, b_pad = _choose_tiling(B, din, in_bytes, tb=tb, max_tb=max_tb)
    if b_pad != B:
        xc = jnp.pad(xc, ((0, b_pad - B), (0, 0)))

    const = lambda i: (0, 0)
    cost = pl.CostEstimate(
        flops=2 * b_pad * (din * HIDDEN + HIDDEN * HIDDEN + HIDDEN),
        transcendentals=b_pad,                                     # one exp per row
        bytes_accessed=b_pad * din * in_bytes + b_pad * 4
        + (din * HIDDEN + HIDDEN * HIDDEN) * in_bytes + (3 * HIDDEN + 1) * 4,
    )

    out = pl.pallas_call(
        att2_kernel,
        out_shape=jax.ShapeDtypeStruct((b_pad // 128, 128), jnp.float32),
        grid=(grid,),
        in_specs=[
            # x: the only streamed operand (double-buffered by BlockSpec).
            pl.BlockSpec((tb, din), lambda i: (i, 0)),
            pl.BlockSpec((din, HIDDEN), const),                    # w1 (VMEM resident)
            pl.BlockSpec((1, HIDDEN), const),                      # b1
            pl.BlockSpec((HIDDEN, HIDDEN), const),                 # w2
            pl.BlockSpec((1, HIDDEN), const),                      # b2
            pl.BlockSpec((1, HIDDEN), const),                      # w3 row (f32)
            pl.BlockSpec(memory_space=pltpu.MemorySpace.SMEM),     # b3 scalar
        ],
        # Dense (tb//128, 128) output block: full-tile unmasked stores.
        out_specs=pl.BlockSpec((tb // 128, 128), lambda i: (i, 0)),
        compiler_params=pltpu.CompilerParams(
            dimension_semantics=("parallel",),
            vmem_limit_bytes=vmem_limit_bytes,
        ),
        cost_estimate=cost,
    )(xc, w1c, b1, w2c, b2, w3_row, b3_s)

    # Row-major (b_pad//128, 128) -> (b_pad, 1); drop padded rows.
    return out.reshape(b_pad, 1)[:B]


def init_params(key, din):
    # PyTorch nn.Linear default init U(-1/sqrt(fan_in), +1/sqrt(fan_in)),
    # returned with PyTorch-flavored shapes (1-D biases, (64,1) fc3 weight).
    ks = jax.random.split(key, 6)

    def lin(kw, kb, fan_in, fan_out):
        bound = 1.0 / (fan_in ** 0.5)
        w = jax.random.uniform(kw, (fan_in, fan_out), jnp.float32, -bound, bound)
        b = jax.random.uniform(kb, (fan_out,), jnp.float32, -bound, bound)
        return w, b

    w1, b1 = lin(ks[0], ks[1], din, HIDDEN)
    w2, b2 = lin(ks[2], ks[3], HIDDEN, HIDDEN)
    w3, b3 = lin(ks[4], ks[5], HIDDEN, 1)
    return (w1, b1, w2, b2, w3, b3)


def att2_reference(x, params, compute_dtype=jnp.float32):
    """Pure-JAX reference.  With compute_dtype=bf16 it mirrors the kernel's
    mixed-precision recipe; with f32 it is the PyTorch-semantics model."""
    w1, b1, w2, b2, w3, b3 = params
    b1 = jnp.asarray(b1, jnp.float32).reshape(1, HIDDEN)
    b2 = jnp.asarray(b2, jnp.float32).reshape(1, HIDDEN)
    w3r = jnp.asarray(w3, jnp.float32).reshape(1, HIDDEN)
    b3 = jnp.asarray(b3, jnp.float32).reshape(1, 1)
    h1 = jnp.dot(x.astype(compute_dtype), jnp.asarray(w1).astype(compute_dtype),
                 preferred_element_type=jnp.float32) + b1
    h1 = jnp.maximum(h1, 0.0)
    h2 = jnp.dot(h1.astype(compute_dtype), jnp.asarray(w2).astype(compute_dtype),
                 preferred_element_type=jnp.float32) + b2
    h2 = jnp.maximum(h2, 0.0)
    z = jnp.sum(h2 * w3r, axis=-1, keepdims=True) + b3
    return jax.nn.sigmoid(z)


if __name__ == "__main__":
    key = jax.random.PRNGKey(0)
    kx1, kx2, kx3, kp = jax.random.split(key, 4)

    din = 32
    params = init_params(kp, din)

    def check(x, **kw):
        out = jax.block_until_ready(att2_forward(x, params, **kw))
        assert out.shape == (x.shape[0], 1), out.shape
        # Tight check against a reference with the same bf16/f32 mixed precision.
        ref_matched = att2_reference(x, params, compute_dtype=jnp.bfloat16)
        assert jnp.allclose(out, ref_matched, atol=2e-3, rtol=2e-3), \
            "mismatch vs matched-precision reference"
        # Loose sanity check against the pure-f32 (PyTorch-semantics) reference.
        ref_f32 = att2_reference(x, params, compute_dtype=jnp.float32)
        assert jnp.allclose(out, ref_f32, atol=5e-2, rtol=5e-2), \
            "mismatch vs f32 reference"
        return out

    # 1) Small batch: single grid step, tb = 128.
    check(jax.random.normal(kx1, (8, din), jnp.float32))
    # 2) Explicit small tile: multi-step grid (grid = 3) + tail padding/slicing.
    check(jax.random.normal(kx2, (300, din), jnp.float32), tb=128)
    # 3) Auto tiling: grid >= 2 (v7x dual-TC), balanced tiles, padded last tile.
    check(jax.random.normal(kx3, (640, din), jnp.float32))

    print("KERNEL_OK")
</pallas_src>

<mosaic_0001>
module attributes {stable_mosaic.version = 11 : i64} {
  func.func @att2_kernel(%arg0: i32, %arg1: memref<128x32xbf16, #tpu.memory_space<vmem>>, %arg2: memref<32x64xbf16, #tpu.memory_space<vmem>>, %arg3: memref<1x64xf32, #tpu.memory_space<vmem>>, %arg4: memref<64x64xbf16, #tpu.memory_space<vmem>>, %arg5: memref<1x64xf32, #tpu.memory_space<vmem>>, %arg6: memref<1x64xf32, #tpu.memory_space<vmem>>, %arg7: memref<1x1xf32, #tpu.memory_space<smem>>, %arg8: memref<1x128xf32, #tpu.memory_space<vmem>>) attributes {dimension_semantics = [#tpu.dimension_semantics<parallel>], iteration_bounds = array<i64: 1>, scalar_prefetch = 0 : i64, scratch_operands = 0 : i64, tpu.core_type = #tpu.core_type<tc>, window_params = [{transform_indices = @transform_0, window_bounds = array<i64: 128, 32>}, {pipeline_mode = #tpu.pipeline_mode<synchronous>, transform_indices = @transform_1, window_bounds = array<i64: 32, 64>}, {pipeline_mode = #tpu.pipeline_mode<synchronous>, transform_indices = @transform_2, window_bounds = array<i64: 1, 64>}, {pipeline_mode = #tpu.pipeline_mode<synchronous>, transform_indices = @transform_3, window_bounds = array<i64: 64, 64>}, {pipeline_mode = #tpu.pipeline_mode<synchronous>, transform_indices = @transform_4, window_bounds = array<i64: 1, 64>}, {pipeline_mode = #tpu.pipeline_mode<synchronous>, transform_indices = @transform_5, window_bounds = array<i64: 1, 64>}, {transform_indices = @transform_6, window_bounds = array<i64: 1, 1>}, {transform_indices = @transform_7, window_bounds = array<i64: 1, 128>}]} {
    %c0 = arith.constant 0 : index
    %c0_0 = arith.constant 0 : index
    %0 = vector.load %arg1[%c0, %c0_0] : memref<128x32xbf16, #tpu.memory_space<vmem>>, vector<128x32xbf16>
    %c0_1 = arith.constant 0 : index
    %c0_2 = arith.constant 0 : index
    %1 = vector.load %arg2[%c0_1, %c0_2] : memref<32x64xbf16, #tpu.memory_space<vmem>>, vector<32x64xbf16>
    %cst = arith.constant dense<0.000000e+00> : vector<128x64xf32>
    %2 = tpu.matmul %0, %1, %cst {dimension_numbers = #tpu.dot_dimension_numbers<[1], [0], [0], [1], [0, 0, 1, 1], [], []>} : vector<128x32xbf16>, vector<32x64xbf16>, vector<128x64xf32> -> vector<128x64xf32>
    %c0_3 = arith.constant 0 : index
    %c0_4 = arith.constant 0 : index
    %3 = vector.load %arg3[%c0_3, %c0_4] : memref<1x64xf32, #tpu.memory_space<vmem>>, vector<1x64xf32>
    %4 = vector.broadcast %3 : vector<1x64xf32> to vector<128x64xf32>
    %5 = arith.addf %2, %4 : vector<128x64xf32>
    %cst_5 = arith.constant 0.000000e+00 : f32
    %6 = vector.broadcast %cst_5 : f32 to vector<128x64xf32>
    %7 = arith.maximumf %5, %6 : vector<128x64xf32>
    %8 = arith.truncf %7 : vector<128x64xf32> to vector<128x64xbf16>
    %c0_6 = arith.constant 0 : index
    %c0_7 = arith.constant 0 : index
    %9 = vector.load %arg4[%c0_6, %c0_7] : memref<64x64xbf16, #tpu.memory_space<vmem>>, vector<64x64xbf16>
    %cst_8 = arith.constant dense<0.000000e+00> : vector<128x64xf32>
    %10 = tpu.matmul %8, %9, %cst_8 {dimension_numbers = #tpu.dot_dimension_numbers<[1], [0], [0], [1], [0, 0, 1, 1], [], []>} : vector<128x64xbf16>, vector<64x64xbf16>, vector<128x64xf32> -> vector<128x64xf32>
    %c0_9 = arith.constant 0 : index
    %c0_10 = arith.constant 0 : index
    %11 = vector.load %arg5[%c0_9, %c0_10] : memref<1x64xf32, #tpu.memory_space<vmem>>, vector<1x64xf32>
    %12 = vector.broadcast %11 : vector<1x64xf32> to vector<128x64xf32>
    %13 = arith.addf %10, %12 : vector<128x64xf32>
    %cst_11 = arith.constant 0.000000e+00 : f32
    %14 = vector.broadcast %cst_11 : f32 to vector<128x64xf32>
    %15 = arith.maximumf %13, %14 : vector<128x64xf32>
    %c0_12 = arith.constant 0 : index
    %c0_13 = arith.constant 0 : index
    %16 = vector.load %arg6[%c0_12, %c0_13] : memref<1x64xf32, #tpu.memory_space<vmem>>, vector<1x64xf32>
    %17 = vector.broadcast %16 : vector<1x64xf32> to vector<128x64xf32>
    %18 = arith.mulf %15, %17 : vector<128x64xf32>
    %cst_14 = arith.constant dense<0.000000e+00> : vector<128xf32>
    %19 = vector.multi_reduction <add>, %18, %cst_14 [1] : vector<128x64xf32> to vector<128xf32>
    %c0_15 = arith.constant 0 : index
    %c0_16 = arith.constant 0 : index
    %20 = memref.load %arg7[%c0_15, %c0_16] : memref<1x1xf32, #tpu.memory_space<smem>>
    %21 = vector.broadcast %20 : f32 to vector<128xf32>
    %22 = arith.addf %19, %21 : vector<128xf32>
    %cst_17 = arith.constant 0.000000e+00 : f32
    %23 = vector.broadcast %cst_17 : f32 to vector<128xf32>
    %24 = arith.subf %23, %22 : vector<128xf32>
    %25 = math.exp %24 : vector<128xf32>
    %cst_18 = arith.constant 1.000000e+00 : f32
    %26 = vector.broadcast %cst_18 : f32 to vector<128xf32>
    %27 = arith.addf %26, %25 : vector<128xf32>
    %cst_19 = arith.constant 1.000000e+00 : f32
    %28 = vector.broadcast %cst_19 : f32 to vector<128xf32>
    %29 = arith.divf %28, %27 : vector<128xf32>
    %30 = vector.shape_cast %29 : vector<128xf32> to vector<1x128xf32>
    %c0_20 = arith.constant 0 : index
    %c0_21 = arith.constant 0 : index
    %31 = vector.load %arg8[%c0_20, %c0_21] : memref<1x128xf32, #tpu.memory_space<vmem>>, vector<1x128xf32>
    tpu.vector_store %arg8[%c0_20, %c0_21], %30 {strides = array<i32>} : memref<1x128xf32, #tpu.memory_space<vmem>>, vector<1x128xf32>,
    return
  }
  func.func @transform_0(%arg0: i32) -> (i32, i32) {
    %c0_i32 = arith.constant 0 : i32
    %c0_i32_0 = arith.constant 0 : i32
    return %arg0, %c0_i32 : i32, i32
  }
  func.func @transform_1(%arg0: i32) -> (i32, i32) {
    %c0_i32 = arith.constant 0 : i32
    %c0_i32_0 = arith.constant 0 : i32
    %c0_i32_1 = arith.constant 0 : i32
    return %c0_i32, %c0_i32_0 : i32, i32
  }
  func.func @transform_2(%arg0: i32) -> (i32, i32) {
    %c0_i32 = arith.constant 0 : i32
    %c0_i32_0 = arith.constant 0 : i32
    %c0_i32_1 = arith.constant 0 : i32
    return %c0_i32, %c0_i32_0 : i32, i32
  }
  func.func @transform_3(%arg0: i32) -> (i32, i32) {
    %c0_i32 = arith.constant 0 : i32
    %c0_i32_0 = arith.constant 0 : i32
    %c0_i32_1 = arith.constant 0 : i32
    return %c0_i32, %c0_i32_0 : i32, i32
  }
  func.func @transform_4(%arg0: i32) -> (i32, i32) {
    %c0_i32 = arith.constant 0 : i32
    %c0_i32_0 = arith.constant 0 : i32
    %c0_i32_1 = arith.constant 0 : i32
    return %c0_i32, %c0_i32_0 : i32, i32
  }
  func.func @transform_5(%arg0: i32) -> (i32, i32) {
    %c0_i32 = arith.constant 0 : i32
    %c0_i32_0 = arith.constant 0 : i32
    %c0_i32_1 = arith.constant 0 : i32
    return %c0_i32, %c0_i32_0 : i32, i32
  }
  func.func @transform_6(%arg0: i32) -> (i32, i32) {
    %c0_i32 = arith.constant 0 : i32
    %c0_i32_0 = arith.constant 0 : i32
    %c0_i32_1 = arith.constant 0 : i32
    return %c0_i32, %c0_i32_0 : i32, i32
  }
  func.func @transform_7(%arg0: i32) -> (i32, i32) {
    %c0_i32 = arith.constant 0 : i32
    %c0_i32_0 = arith.constant 0 : i32
    return %arg0, %c0_i32 : i32, i32
  }
}

</mosaic_0001>

<bundles_post_ra>
// kernel: tpu_custom_call.1
= control target key start
LH: loop header
LB: loop body
LE: loop exit
PB: predicated region body
PF: predicated region fallthrough
CT: control target
= control target key end

     0   :  { %vm108_vm0 = vcmask 261120   ;;  %s1195_s0 = inlined_call_operand.vmem [shape: bf16[128,32], index: 0, kind: input, shape index: {}]   ;;  %s1196_s1 = inlined_call_operand.vmem [shape: bf16[32,64], index: 1, kind: input, shape index: {}]   ;;  %s1197_s2 = inlined_call_operand.vmem [shape: f32[1,64], index: 2, kind: input, shape index: {}]   ;;  %s1198_s3 = inlined_call_operand.vmem [shape: bf16[64,64], index: 3, kind: input, shape index: {}]   ;;  %s1199_s4 = inlined_call_operand.vmem [shape: f32[1,64], index: 4, kind: input, shape index: {}]   ;;  %s1200_s5 = inlined_call_operand.vmem [shape: f32[1,64], index: 5, kind: input, shape index: {}]   ;;  %s1201_s6 = inlined_call_operand.<no memory space> [shape: f32[1,1], index: 6, kind: input, shape index: {}]   ;;  %s1202_s7 = inlined_call_operand.hbm [shape: f32[1,128], index: 7, kind: output, shape index: {}]  }
   0x1   :  { %v859_v0 = vld [vmem:[%s1196_s1] sm:$0xff]   ;;  %v860_v1 = vld [vmem:[%s1196_s1 + $0x8] sm:$0xff]   ;;  %v863_v4 = vld [vmem:[%s1195_s0 + $0x10] sm:$0xff]  }
   0x2   :  { %814 = vmatprep.subr.bf16.mxu0 %v859_v0  ;;  %v861_v2 = vld [vmem:[%s1195_s0] sm:$0xff]   ;;  %v862_v3 = vld [vmem:[%s1195_s0 + $0x8] sm:$0xff]  }
   0x3   :  { %815 = vmatpush3.bf16.msra.mxu0 %v859_v0  ;;  %818 = vmatprep.mubr.msk.bf16.mxu0 %vm108_vm0, %v861_v2  ;;  %v869_v5 = vld [vmem:[%s1198_s3] sm:$0xff]   ;;  %v870_v6 = vld [vmem:[%s1198_s3 + $0x8] sm:$0xff]  }
   0x4   :  { %816 = vmatprep.subr.bf16.mxu0 %v860_v1  ;;  %834 = vmatprep.subr.bf16.mxu1 %v869_v5 }
   0x5   :  { %835 = vmatpush3.bf16.msra.mxu1 %v869_v5 }
   0x7   :  { %817 = vmatpush3.bf16.msra.mxu0 %v860_v1 }
   0xa   :  { %819 = vmatmul.mubr.msk.bf16.vlgmr.msra.gmra.mrb[0].mxu0 %vm108_vm0, %v862_v3 }
   0xb   :  { %822 = vmatprep.mubr.msk.bf16.mxu0 %vm108_vm0, %v863_v4 }
   0xc   :  { %13 = vsyncpa [#allocation4], 0  ;;  %v864_v7 = vld [vmem:[%s1195_s0 + $0x18] sm:$0xff]   ;;  %836 = vmatprep.subr.bf16.mxu1 %v870_v6  ;;  %v865_v8 = vld [vmem:[%s1195_s0 + $0x20] sm:$0xff]   ;;  %vm293_vm1 = vcmask 523264   ;;  %vm643_vm2 = vcmask 130112  }
   0xd   :  { %837 = vmatpush3.bf16.msra.mxu1 %v870_v6  ;;  %v866_v9 = vld [vmem:[%s1195_s0 + $0x28] sm:$0xff]   ;;  %v867_v10 = vld [vmem:[%s1195_s0 + $0x30] sm:$0xff]   ;;  %v868_v11 = vld [vmem:[%s1195_s0 + $0x38] sm:$0xff]   ;;  %vm650_vm3 = vcmask 195712   ;;  %vm657_vm4 = vcmask 261312   ;;  %vm664_vm5 = vcmask 326912  }
   0xe   :  { %v871_v12 = vld [vmem:[%s1198_s3 + $0x10] sm:$0xff]   ;;  %v872_v13 = vld [vmem:[%s1198_s3 + $0x18] sm:$0xff]   ;;  %v759_v14 = vld [vmem:[%s1197_s2] ss:$0 sm:$0xff]  ;;  %vm671_vm6 = vcmask 392512   ;;  %vm678_vm7 = vcmask 458112  }
   0xf   :  { %838 = vmatprep.subr.bf16.mxu1 %v871_v12  ;;  %vm685_vm8 = vcmask 523712   ;;  %vm692_vm9 = vcmask 589312   ;;  %vm699_vm10 = vcmask 654912   ;;  %vm706_vm11 = vcmask 720512  }
  0x10   :  { %vm713_vm12 = vcmask 786112   ;;  %vm720_vm13 = vcmask 851712   ;;  %vm727_vm14 = vcmask 917312   ;;  %vm734_vm15 = vcmask 982912  }
  0x11   :  { %839 = vmatpush3.bf16.msra.mxu1 %v871_v12 }
  0x12   :  { %823 = vmatmul.mubr.msk.bf16.gmra.mrb[4].mxu0 %vm108_vm0, %v864_v7  ;;  %840 = vmatprep.subr.bf16.mxu1 %v872_v13  ;;  %v1066_v7 = vld [vmem:[%s1199_s4] ss:$0 sm:$0xff] }
  0x13   :  { %826 = vmatprep.mubr.msk.bf16.mxu0 %vm108_vm0, %v865_v8 }
  0x15   :  { %841 = vmatpush3.bf16.msra.mxu1 %v872_v13  ;;  %v1073_v13 = vld [vmem:[%s1200_s5] ss:$0 sm:$0xff] }
  0x1a   :  { %827 = vmatmul.mubr.msk.bf16.gmra.mrb[8].mxu0 %vm108_vm0, %v866_v9 }
  0x1b   :  { %830 = vmatprep.mubr.msk.bf16.mxu0 %vm108_vm0, %v867_v10 }
  0x22   :  { %831 = vmatmul.mubr.msk.bf16.gmra.mrb[12].mxu0 %vm108_vm0, %v868_v11  ;;  %vm741_vm0 = vcmask 1048512  }
  0xdd   :  { %v820_v15 = vpop.f32.mrb[0].mxu0 }
  0xde   :  { %v176_v16 = vadd.f32 %v820_v15, %v759_v14  ;;  %v167_v17 = vpop.f32.mrb[1].mxu0 }
  0xdf   :  { %v168_v18 = vadd.f32 %v759_v14, %v167_v17  ;;  %v821_v19 = vpop.f32.mrb[2].mxu0 }
  0xe0   :  { %v179_v20 = vadd.f32 %v821_v19, %v759_v14  ;;  %v170_v21 = vpop.f32.mrb[3].mxu0  ;;  %v232_v23 = vmax.f32 %v176_v16, 0.0 }
  0xe1   :  { %v171_v22 = vadd.f32 %v759_v14, %v170_v21  ;;  %v230_v25 = vmax.f32 %v168_v18, 0.0 }
  0xe2   :  { %v233_v24 = vmax.f32 %v179_v20, 0.0 }
  0xe3   :  { %v231_v26 = vmax.f32 %v171_v22, 0.0 }
  0xe4   :  { %v247_v27 = vpack.c.bf16 %v233_v24, %v232_v23 }
  0xe5   :  { %v824_v28 = vpop.f32.mrb[4].mxu0  ;;  %v246_v29 = vpack.c.bf16 %v231_v26, %v230_v25 }
  0xe6   :  { %v192_v30 = vadd.f32 %v824_v28, %v759_v14  ;;  %v183_v31 = vpop.f32.mrb[5].mxu0 }
  0xe7   :  { %v184_v32 = vadd.f32 %v759_v14, %v183_v31  ;;  %v825_v33 = vpop.f32.mrb[6].mxu0  ;;  %842 = vmatprep.mubr.msk.bf16.mxu1 %vm293_vm1, %v246_v29 }
  0xe8   :  { %v195_v34 = vadd.f32 %v825_v33, %v759_v14  ;;  %v186_v35 = vpop.f32.mrb[7].mxu0  ;;  %843 = vmatmul.mubr.msk.bf16.vlgmr.msra.gmra.mrb[0].mxu1 %vm293_vm1, %v247_v27  ;;  %v236_v37 = vmax.f32 %v192_v30, 0.0 }
  0xe9   :  { %v187_v36 = vadd.f32 %v759_v14, %v186_v35  ;;  %v234_v39 = vmax.f32 %v184_v32, 0.0 }
  0xea   :  { %v237_v38 = vmax.f32 %v195_v34, 0.0 }
  0xeb   :  { %v235_v40 = vmax.f32 %v187_v36, 0.0 }
  0xec   :  { %v249_v41 = vpack.c.bf16 %v237_v38, %v236_v37 }
  0xed   :  { %v248_v42 = vpack.c.bf16 %v235_v40, %v234_v39  ;;  %v828_v43 = vpop.f32.mrb[8].mxu0 }
  0xee   :  { %v208_v44 = vadd.f32 %v828_v43, %v759_v14  ;;  %v199_v45 = vpop.f32.mrb[9].mxu0 }
  0xef   :  { %v200_v46 = vadd.f32 %v759_v14, %v199_v45  ;;  %v829_v47 = vpop.f32.mrb[10].mxu0  ;;  %846 = vmatprep.mubr.msk.bf16.mxu1 %vm293_vm1, %v248_v42 }
  0xf0   :  { %v211_v48 = vadd.f32 %v829_v47, %v759_v14  ;;  %v202_v49 = vpop.f32.mrb[11].mxu0  ;;  %847 = vmatmul.mubr.msk.bf16.gmra.mrb[4].mxu1 %vm293_vm1, %v249_v41  ;;  %v240_v51 = vmax.f32 %v208_v44, 0.0 }
  0xf1   :  { %v203_v50 = vadd.f32 %v759_v14, %v202_v49  ;;  %v238_v53 = vmax.f32 %v200_v46, 0.0 }
  0xf2   :  { %v241_v52 = vmax.f32 %v211_v48, 0.0 }
  0xf3   :  { %v239_v54 = vmax.f32 %v203_v50, 0.0 }
  0xf4   :  { %v251_v55 = vpack.c.bf16 %v241_v52, %v240_v51 }
  0xf5   :  { %v250_v56 = vpack.c.bf16 %v239_v54, %v238_v53  ;;  %v832_v57 = vpop.f32.mrb[12].mxu0 }
  0xf6   :  { %v224_v58 = vadd.f32 %v832_v57, %v759_v14  ;;  %v215_v59 = vpop.f32.mrb[13].mxu0 }
  0xf7   :  { %v216_v60 = vadd.f32 %v759_v14, %v215_v59  ;;  %v833_v61 = vpop.f32.mrb[14].mxu0  ;;  %850 = vmatprep.mubr.msk.bf16.mxu1 %vm293_vm1, %v250_v56 }
  0xf8   :  { %v227_v62 = vadd.f32 %v833_v61, %v759_v14  ;;  %v218_v63 = vpop.f32.mrb[15].mxu0  ;;  %851 = vmatmul.mubr.msk.bf16.gmra.mrb[8].mxu1 %vm293_vm1, %v251_v55  ;;  %v244_v1 = vmax.f32 %v224_v58, 0.0 }
  0xf9   :  { %v219_v0 = vadd.f32 %v759_v14, %v218_v63  ;;  %v242_v3 = vmax.f32 %v216_v60, 0.0 }
  0xfa   :  { %v245_v2 = vmax.f32 %v227_v62, 0.0 }
  0xfb   :  { %v243_v4 = vmax.f32 %v219_v0, 0.0 }
  0xfc   :  { %v253_v5 = vpack.c.bf16 %v245_v2, %v244_v1 }
  0xfd   :  { %v252_v6 = vpack.c.bf16 %v243_v4, %v242_v3 }
  0xff   :  { %854 = vmatprep.mubr.msk.bf16.mxu1 %vm293_vm1, %v252_v6 }
 0x100   :  { %855 = vmatmul.mubr.msk.bf16.gmra.mrb[12].mxu1 %vm293_vm1, %v253_v5 }
 0x1bb   :  { %v844_v8 = vpop.f32.mrb[0].mxu1 }
 0x1bc   :  { %v361_v9 = vadd.f32 %v844_v8, %v1066_v7  ;;  %v352_v10 = vpop.f32.mrb[1].mxu1 }
 0x1bd   :  { %v353_v11 = vadd.f32 %v1066_v7, %v352_v10  ;;  %v845_v12 = vpop.f32.mrb[2].mxu1 }
 0x1be   :  { %v417_v14 = vmax.f32 %v361_v9, 0.0  ;;  %v364_v15 = vadd.f32 %v845_v12, %v1066_v7  ;;  %v355_v16 = vpop.f32.mrb[3].mxu1 }
 0x1bf   :  { %v415_v17 = vmax.f32 %v353_v11, 0.0  ;;  %v356_v18 = vadd.f32 %v1066_v7, %v355_v16 }
 0x1c0   :  { %v418_v19 = vmax.f32 %v364_v15, 0.0  ;;  %v440_v20 = vmul.f32 %v1073_v13, %v417_v14 }
 0x1c1   :  { %v416_v21 = vmax.f32 %v356_v18, 0.0  ;;  %v438_v22 = vmul.f32 %v1073_v13, %v415_v17 }
 0x1c2   :  { %v460_v23 = vsel %vm293_vm1, %v440_v20, 0.0  ;;  %v441_v24 = vmul.f32 %v1073_v13, %v418_v19 }
 0x1c3   :  { %461 = vadd.xlane.f32.xlu1 %v460_v23  ;;  %v848_v25 = vpop.f32.mrb[4].mxu1  ;;  %v454_v26 = vsel %vm293_vm1, %v438_v22, 0.0  ;;  %v439_v27 = vmul.f32 %v1073_v13, %v416_v21 }
 0x1c4   :  { %v377_v28 = vadd.f32 %v848_v25, %v1066_v7  ;;  %v368_v29 = vpop.f32.mrb[5].mxu1  ;;  %455 = vadd.xlane.f32.xlu0 %v454_v26  ;;  %v463_v35 = vsel %vm293_vm1, %v441_v24, 0.0  ;;  %v1124_v26 = vstv %s1201_s6  ;;  %s961_s6 = smov [#allocation3]  }
 0x1c5   :  { %v369_v30 = vadd.f32 %v1066_v7, %v368_v29  ;;  %v849_v31 = vpop.f32.mrb[6].mxu1  ;;  %v457_v38 = vsel %vm293_vm1, %v439_v27, 0.0  ;;  %s751_s8 = sshll.u32 %s961_s6, 4  ;;  %s752_s8 = int_to_ptr.vmem [resolvable:$true] %s751_s8 }
 0x1c6   :  { %v421_v32 = vmax.f32 %v377_v28, 0.0  ;;  %v380_v33 = vadd.f32 %v849_v31, %v1066_v7  ;;  %v371_v34 = vpop.f32.mrb[7].mxu1  ;;  %s937_s9 = scalar_lea.vmem %s752_s8, 16  ;;  %s941_s10 = scalar_lea.vmem %s752_s8, 32 }
 0x1c7   :  { %v419_v36 = vmax.f32 %v369_v30, 0.0  ;;  %v372_v37 = vadd.f32 %v1066_v7, %v371_v34  ;;  %464 = vadd.xlane.f32.xlu1 %v463_v35  ;;  %p938_p0 = scmp.ne.s32.totalorder %s752_s8, %s937_s9  ;;  %p942_p1 = scmp.lt.s32.totalorder %s752_s8, %s752_s8 }
 0x1c8   :  { %v422_v39 = vmax.f32 %v380_v33, 0.0  ;;  %458 = vadd.xlane.f32.xlu0 %v457_v38  ;;  %v444_v40 = vmul.f32 %v1073_v13, %v421_v32  ;;  %p943_p2 = scmp.lt.s32.totalorder %s941_s10, %s937_s9 }
 0x1c9   :  { %v420_v41 = vmax.f32 %v372_v37, 0.0  ;;  %v442_v45 = vmul.f32 %v1073_v13, %v419_v36 }
 0x1ca   :  { %v472_v42 = vsel %vm293_vm1, %v444_v40, 0.0  ;;  %v445_v43 = vmul.f32 %v1073_v13, %v422_v39  ;;  %p944_p3 = por %p943_p2, %p942_p1 }
 0x1cb   :  { %v852_v44 = vpop.f32.mrb[8].mxu1  ;;  %v443_v49 = vmul.f32 %v1073_v13, %v420_v41  ;;  %v466_v57 = vsel %vm293_vm1, %v442_v45, 0.0 }
 0x1cc   :  { %v393_v46 = vadd.f32 %v852_v44, %v1066_v7  ;;  %v384_v47 = vpop.f32.mrb[9].mxu1  ;;  %473 = vadd.xlane.f32.xlu0 %v472_v42  ;;  %v475_v48 = vsel %vm293_vm1, %v445_v43, 0.0  ;;  %p945_p4 = pnand %p944_p3, %p938_p0 }
 0x1cd   :  { %v385_v50 = vadd.f32 %v1066_v7, %v384_v47  ;;  %476 = vadd.xlane.f32.xlu1 %v475_v48  ;;  %v853_v51 = vpop.f32.mrb[10].mxu1  ;;  %v469_v59 = vsel %vm293_vm1, %v443_v49, 0.0 }
 0x1ce   :  { %v425_v52 = vmax.f32 %v393_v46, 0.0  ;;  %v396_v53 = vadd.f32 %v853_v51, %v1066_v7  ;;  %v387_v54 = vpop.f32.mrb[11].mxu1 }
 0x1cf   :  { %v423_v55 = vmax.f32 %v385_v50, 0.0  ;;  %v388_v56 = vadd.f32 %v1066_v7, %v387_v54 }
 0x1d0   :  { %v426_v58 = vmax.f32 %v396_v53, 0.0  ;;  %467 = vadd.xlane.f32.xlu0 %v466_v57  ;;  %v448_v60 = vmul.f32 %v1073_v13, %v425_v52 }
 0x1d1   :  { %v424_v61 = vmax.f32 %v388_v56, 0.0  ;;  %470 = vadd.xlane.f32.xlu1 %v469_v59  ;;  %v446_v1 = vmul.f32 %v1073_v13, %v423_v55 }
 0x1d2   :  { %v484_v62 = vsel %vm293_vm1, %v448_v60, 0.0  ;;  %v449_v63 = vmul.f32 %v1073_v13, %v426_v58 }
 0x1d3   :  { %v856_v0 = vpop.f32.mrb[12].mxu1  ;;  %v447_v5 = vmul.f32 %v1073_v13, %v424_v61  ;;  %v478_v15 = vsel %vm293_vm1, %v446_v1, 0.0 }
 0x1d4   :  { %v409_v2 = vadd.f32 %v856_v0, %v1066_v7  ;;  %v400_v3 = vpop.f32.mrb[13].mxu1  ;;  %485 = vadd.xlane.f32.xlu0 %v484_v62  ;;  %v487_v4 = vsel %vm293_vm1, %v449_v63, 0.0 }
 0x1d5   :  { %v401_v6 = vadd.f32 %v1066_v7, %v400_v3  ;;  %v857_v8 = vpop.f32.mrb[14].mxu1  ;;  %488 = vadd.xlane.f32.xlu1 %v487_v4  ;;  %v481_v16 = vsel %vm293_vm1, %v447_v5, 0.0  ;;  %v632_v5 = vlaneseq }
 0x1d6   :  { %v412_v9 = vadd.f32 %v857_v8, %v1066_v7  ;;  %v403_v10 = vpop.f32.mrb[15].mxu1  ;;  %v429_v11 = vmax.f32 %v409_v2, 0.0 }
 0x1d7   :  { %v427_v12 = vmax.f32 %v401_v6, 0.0  ;;  %v404_v14 = vadd.f32 %v1066_v7, %v403_v10 }
 0x1d8   :  { %479 = vadd.xlane.f32.xlu0 %v478_v15  ;;  %v430_v17 = vmax.f32 %v412_v9, 0.0  ;;  %v452_v22 = vmul.f32 %v1073_v13, %v429_v11 }
 0x1d9   :  { %v428_v18 = vmax.f32 %v404_v14, 0.0  ;;  %482 = vadd.xlane.f32.xlu1 %v481_v16  ;;  %v450_v19 = vmul.f32 %v1073_v13, %v427_v12 }
 0x1da   :  { %v453_v7 = vmul.f32 %v1073_v13, %v430_v17  ;;  %v496_v24 = vsel %vm293_vm1, %v452_v22, 0.0 }
 0x1db   :  { %v490_v20 = vsel %vm293_vm1, %v450_v19, 0.0  ;;  %v451_v21 = vmul.f32 %v1073_v13, %v428_v18 }
 0x1dc   :  { %491 = vadd.xlane.f32.xlu0 %v490_v20  ;;  %v499_v25 = vsel %vm293_vm1, %v453_v7, 0.0 }
 0x1dd   :  { %v493_v23 = vsel %vm293_vm1, %v451_v21, 0.0 }
 0x1de   :  { %494 = vadd.xlane.f32.xlu1 %v493_v23  ;;  %v1139_v23 = vand.u32 127, %v632_v5 }
 0x1e0   :  { %497 = vadd.xlane.f32.xlu0 %v496_v24 }
 0x1e2   :  { %500 = vadd.xlane.f32.xlu1 %v499_v25 }
 0x250   :  { %v462_v27 = vpop.xlane.xlu1 %461 }
 0x251   :  { %v506_v28 = vadd.f32 %v1124_v26, %v462_v27  ;;  %v456_v29 = vpop.xlane.xlu0 %455 }
 0x252   :  { %v504_v30 = vadd.f32 %v1124_v26, %v456_v29 }
 0x253   :  { %v522_v31 = vsub.f32 0.0, %v506_v28  ;;  %v638_v28 = vadd.s32 4294967288, %v1139_v23 }
 0x254   :  { %v520_v13 = vsub.f32 0.0, %v504_v30  ;;  %v465_v32 = vpop.xlane.xlu1 %464 }
 0x255   :  { %v507_v33 = vadd.f32 %v1124_v26, %v465_v32  ;;  %v459_v34 = vpop.xlane.xlu0 %458  ;;  %v540_v37 = vmul.f32 1.442695, %v522_v31 }
 0x256   :  { %v536_v35 = vmul.f32 1.442695, %v520_v13  ;;  %v505_v36 = vadd.f32 %v1124_v26, %v459_v34  ;;  %v1144_v34 = vshrl.u32 %v632_v5, 7 }
 0x257   :  { %v523_v38 = vsub.f32 0.0, %v507_v33 }
 0x258   :  { %873 = vpow2.f32 %v536_v35  ;;  %v521_v39 = vsub.f32 0.0, %v505_v36 }
 0x259   :  { %v542_v40 = vmul.f32 1.442695, %v523_v38  ;;  %v474_v41 = vpop.xlane.xlu0 %473  ;;  %875 = vpow2.f32 %v540_v37  ;;  %v645_v37 = vadd.s32 4294967280, %v1139_v23 }
 0x25a   :  { %v538_v42 = vmul.f32 1.442695, %v521_v39  ;;  %v510_v43 = vadd.f32 %v1124_v26, %v474_v41  ;;  %v477_v44 = vpop.xlane.xlu1 %476  ;;  %v641_v41 = vsub.s32 %v638_v28, %v1144_v34 }
 0x25b   :  { %v511_v45 = vadd.f32 %v1124_v26, %v477_v44 }
 0x25c   :  { %877 = vpow2.f32 %v538_v42  ;;  %v526_v46 = vsub.f32 0.0, %v510_v43 }
 0x25d   :  { %879 = vpow2.f32 %v542_v40  ;;  %v527_v47 = vsub.f32 0.0, %v511_v45  ;;  %v468_v48 = vpop.xlane.xlu0 %467 }
 0x25e   :  { %v548_v49 = vmul.f32 1.442695, %v526_v46  ;;  %v508_v50 = vadd.f32 %v1124_v26, %v468_v48  ;;  %v471_v51 = vpop.xlane.xlu1 %470 }
 0x25f   :  { %v509_v52 = vadd.f32 %v1124_v26, %v471_v51  ;;  %v550_v54 = vmul.f32 1.442695, %v527_v47 }
 0x260   :  { %881 = vpow2.f32 %v548_v49  ;;  %v524_v53 = vsub.f32 0.0, %v508_v50  ;;  %v636_v49 = vsub.s32 %v1139_v23, %v1144_v34 }
 0x261   :  { %v525_v55 = vsub.f32 0.0, %v509_v52  ;;  %v486_v56 = vpop.xlane.xlu0 %485  ;;  %883 = vpow2.f32 %v550_v54  ;;  %v648_v52 = vsub.s32 %v645_v37, %v1144_v34  ;;  %v673_v54 = vadd.s32 4294967248, %v1139_v23 }
 0x262   :  { %v874_v57 = vpop.eup %873  ;;  %v544_v58 = vmul.f32 1.442695, %v524_v53  ;;  %v514_v59 = vadd.f32 %v1124_v26, %v486_v56  ;;  %v489_v60 = vpop.xlane.xlu1 %488  ;;  %v652_v53 = vadd.s32 4294967272, %v1139_v23  ;;  %v1155_v56 = vadd.s32 4294967240, %v1139_v23 }
 0x263   :  { %v546_v61 = vmul.f32 1.442695, %v525_v55  ;;  %v515_v62 = vadd.f32 %v1124_v26, %v489_v60  ;;  %v568_v63 = vadd.f32 1.0, %v874_v57  ;;  %v876_v1 = vpop.eup %875 }
 0x264   :  { %v530_v0 = vsub.f32 0.0, %v514_v59  ;;  %885 = vpow2.f32 %v544_v58  ;;  %v570_v16 = vadd.f32 1.0, %v876_v1  ;;  %v659_v59 = vadd.s32 4294967264, %v1139_v23 }
 0x265   :  { %v531_v2 = vsub.f32 0.0, %v515_v62  ;;  %v480_v3 = vpop.xlane.xlu0 %479  ;;  %887 = vpow2.f32 %v546_v61 }
 0x266   :  { %v878_v4 = vpop.eup %877  ;;  %v556_v6 = vmul.f32 1.442695, %v530_v0  ;;  %v512_v8 = vadd.f32 %v1124_v26, %v480_v3  ;;  %v483_v9 = vpop.xlane.xlu1 %482  ;;  %889 = vrcp.f32 %v568_v63  ;;  %v666_v63 = vadd.s32 4294967256, %v1139_v23 }
 0x267   :  { %v880_v10 = vpop.eup %879  ;;  %v569_v11 = vadd.f32 1.0, %v878_v4  ;;  %v558_v12 = vmul.f32 1.442695, %v531_v2  ;;  %v513_v14 = vadd.f32 %v1124_v26, %v483_v9  ;;  %v655_v3 = vsub.s32 %v652_v53, %v1144_v34 }
 0x268   :  { %v528_v15 = vsub.f32 0.0, %v512_v8  ;;  %v571_v20 = vadd.f32 1.0, %v880_v10  ;;  %v683_v8 = vsub.s32 %v1155_v56, %v1144_v34  ;;  %v729_v53 = vadd.s32 4294967184, %v1139_v23 }
 0x269   :  { %891 = vrcp.f32 %v569_v11  ;;  %v529_v17 = vsub.f32 0.0, %v513_v14  ;;  %v492_v18 = vpop.xlane.xlu0 %491  ;;  %v662_v11 = vsub.s32 %v659_v59, %v1144_v34 }
 0x26a   :  { %v882_v19 = vpop.eup %881  ;;  %893 = vpow2.f32 %v556_v6  ;;  %v552_v21 = vmul.f32 1.442695, %v528_v15  ;;  %v516_v22 = vadd.f32 %v1124_v26, %v492_v18  ;;  %v676_v6 = vsub.s32 %v673_v54, %v1144_v34 }
 0x26b   :  { %895 = vpow2.f32 %v558_v12  ;;  %v554_v7 = vmul.f32 1.442695, %v529_v17  ;;  %v495_v24 = vpop.xlane.xlu1 %494  ;;  %v574_v29 = vadd.f32 1.0, %v882_v19  ;;  %v884_v33 = vpop.eup %883  ;;  %v669_v15 = vsub.s32 %v666_v63, %v1144_v34 }
 0x26c   :  { %897 = vpow2.f32 %v552_v21  ;;  %v532_v25 = vsub.f32 0.0, %v516_v22  ;;  %v517_v27 = vadd.f32 %v1124_v26, %v495_v24  ;;  %v575_v45 = vadd.f32 1.0, %v884_v33 }
 0x26d   :  { %899 = vrcp.f32 %v570_v16  ;;  %v498_v30 = vpop.xlane.xlu0 %497  ;;  %v687_v16 = vadd.s32 4294967232, %v1139_v23  ;;  %v701_v22 = vadd.s32 4294967216, %v1139_v23  ;;  %v732_v63 = vsub.s32 %v729_v53, %v1144_v34 }
 0x26e   :  { %901 = vrcp.f32 %v571_v20  ;;  %v560_v31 = vmul.f32 1.442695, %v532_v25  ;;  %v533_v13 = vsub.f32 0.0, %v517_v27  ;;  %v518_v32 = vadd.f32 %v1124_v26, %v498_v30  ;;  %v886_v36 = vpop.eup %885 }
 0x26f   :  { %903 = vpow2.f32 %v554_v7  ;;  %v501_v35 = vpop.xlane.xlu1 %500  ;;  %v888_v40 = vpop.eup %887  ;;  %v572_v42 = vadd.f32 1.0, %v886_v36  ;;  %v694_v27 = vadd.s32 4294967224, %v1139_v23  ;;  %v715_v36 = vadd.s32 4294967200, %v1139_v23 }
 0x270   :  { %905 = vpow2.f32 %v560_v31  ;;  %v562_v38 = vmul.f32 1.442695, %v533_v13  ;;  %v534_v39 = vsub.f32 0.0, %v518_v32  ;;  %v519_v43 = vadd.f32 %v1124_v26, %v501_v35  ;;  %v890_v44 = vpop.eup %889 }
 0x271   :  { %907 = vrcp.f32 %v574_v29  ;;  %v573_v46 = vadd.f32 1.0, %v888_v40  ;;  %v637_v62 = vrot.slane %v890_v44, %v636_v49  ;;  %v690_v31 = vsub.s32 %v687_v16, %v1144_v34 }
 0x272   :  { %909 = vpow2.f32 %v562_v38  ;;  %v564_v47 = vmul.f32 1.442695, %v534_v39  ;;  %v535_v50 = vsub.f32 0.0, %v519_v43  ;;  %v708_v38 = vadd.s32 4294967208, %v1139_v23 }
 0x273   :  { %v892_v48 = vpop.eup %891  ;;  %911 = vrcp.f32 %v572_v42  ;;  %v697_v44 = vsub.s32 %v694_v27, %v1144_v34 }
 0x274   :  { %v894_v51 = vpop.eup %893  ;;  %913 = vrcp.f32 %v573_v46  ;;  %v642_v55 = vrot.slane %v892_v48, %v641_v41  ;;  %v566_v60 = vmul.f32 1.442695, %v535_v50  ;;  %v722_v41 = vadd.s32 4294967192, %v1139_v23 }
 0x275   :  { %v896_v26 = vpop.eup %895  ;;  %v578_v57 = vadd.f32 1.0, %v894_v51  ;;  %915 = vpow2.f32 %v564_v47  ;;  %v704_v46 = vsub.s32 %v701_v22, %v1144_v34  ;;  %v718_v48 = vsub.s32 %v715_v36, %v1144_v34 }
 0x276   :  { %v898_v58 = vpop.eup %897  ;;  %917 = vrcp.f32 %v575_v45  ;;  %v579_v0 = vadd.f32 1.0, %v896_v26  ;;  %v644_v5 = vsel %vm643_vm2, %v642_v55, %v637_v62  ;;  %v725_v55 = vsub.s32 %v722_v41, %v1144_v34 }
 0x277   :  { %v900_v61 = vpop.eup %899  ;;  %v576_v1 = vadd.f32 1.0, %v898_v58  ;;  %919 = vrcp.f32 %v578_v57 }
 0x278   :  { %v902_v2 = vpop.eup %901  ;;  %v649_v10 = vrot.slane %v900_v61, %v648_v52  ;;  %v711_v52 = vsub.s32 %v708_v38, %v1144_v34 }
 0x279   :  { %v904_v4 = vpop.eup %903  ;;  %921 = vrcp.f32 %v576_v1  ;;  %v656_v21 = vrot.slane %v902_v2, %v655_v3  ;;  %v736_v2 = vadd.s32 4294967176, %v1139_v23 }
 0x27a   :  { %v906_v9 = vpop.eup %905  ;;  %v577_v12 = vadd.f32 1.0, %v904_v4  ;;  %923 = vpow2.f32 %v566_v60  ;;  %v651_v19 = vsel %vm650_vm3, %v649_v10, %v644_v5 }
 0x27b   :  { %v908_v14 = vpop.eup %907  ;;  %925 = vrcp.f32 %v579_v0  ;;  %v580_v17 = vadd.f32 1.0, %v906_v9  ;;  %v658_v29 = vsel %vm657_vm4, %v656_v21, %v651_v19  ;;  %v739_v9 = vsub.s32 %v736_v2, %v1144_v34 }
 0x27c   :  { %v910_v18 = vpop.eup %909  ;;  %927 = vrcp.f32 %v577_v12  ;;  %v677_v32 = vrot.slane %v908_v14, %v676_v6 }
 0x27d   :  { %v912_v20 = vpop.eup %911  ;;  %929 = vrcp.f32 %v580_v17  ;;  %v581_v7 = vadd.f32 1.0, %v910_v18 }
 0x27e   :  { %v914_v24 = vpop.eup %913  ;;  %v663_v25 = vrot.slane %v912_v20, %v662_v11 }
 0x27f   :  { %v916_v28 = vpop.eup %915  ;;  %v670_v30 = vrot.slane %v914_v24, %v669_v15  ;;  %931 = vrcp.f32 %v581_v7 }
 0x280   :  { %v918_v13 = vpop.eup %917  ;;  %v665_v33 = vsel %vm664_vm5, %v663_v25, %v658_v29  ;;  %v582_v35 = vadd.f32 1.0, %v916_v28 }
 0x281   :  { %v672_v37 = vsel %vm671_vm6, %v670_v30, %v665_v33  ;;  %v920_v39 = vpop.eup %919  ;;  %v684_v43 = vrot.slane %v918_v13, %v683_v8 }
 0x282   :  { %933 = vrcp.f32 %v582_v35  ;;  %v679_v40 = vsel %vm678_vm7, %v677_v32, %v672_v37  ;;  %v705_v58 = vrot.slane %v920_v39, %v704_v46 }
 0x283   :  { %v922_v42 = vpop.eup %921  ;;  %v686_v51 = vsel %vm685_vm8, %v684_v43, %v679_v40 }
 0x284   :  { %v924_v45 = vpop.eup %923  ;;  %v691_v47 = vrot.slane %v922_v42, %v690_v31 }
 0x285   :  { %v926_v49 = vpop.eup %925  ;;  %v583_v50 = vadd.f32 1.0, %v924_v45 }
 0x286   :  { %v928_v54 = vpop.eup %927  ;;  %v693_v26 = vsel %vm692_vm9, %v691_v47, %v686_v51  ;;  %v712_v62 = vrot.slane %v926_v49, %v711_v52 }
 0x287   :  { %v930_v56 = vpop.eup %929  ;;  %v698_v57 = vrot.slane %v928_v54, %v697_v44  ;;  %935 = vrcp.f32 %v583_v50 }
 0x288   :  { %v719_v59 = vrot.slane %v930_v56, %v718_v48 }
 0x289   :  { %v932_v60 = vpop.eup %931  ;;  %v700_v61 = vsel %vm699_vm10, %v698_v57, %v693_v26 }
 0x28a   :  { %v707_v0 = vsel %vm706_vm11, %v705_v58, %v700_v61  ;;  %v726_v1 = vrot.slane %v932_v60, %v725_v55 }
 0x28b   :  { %v714_v3 = vsel %vm713_vm12, %v712_v62, %v707_v0 }
 0x28c   :  { %v934_v4 = vpop.eup %933  ;;  %v721_v5 = vsel %vm720_vm13, %v719_v59, %v714_v3 }
 0x28d   :  { %v733_v6 = vrot.slane %v934_v4, %v732_v63  ;;  %v728_v8 = vsel %vm727_vm14, %v726_v1, %v721_v5 }
 0x28f   :  { %v735_v11 = vsel %vm734_vm15, %v733_v6, %v728_v8 }
 0x291   :  { %v936_v10 = vpop.eup %935 }
 0x292   :  { %v740_v12 = vrot.slane %v936_v10, %v739_v9 }
 0x294   :  { %v742_v14 = vsel %vm741_vm0, %v740_v12, %v735_v11 }
 0x295   :  { %744 = vst [vmem:[#allocation3] sm:$0x1] %v742_v14 }
 0x296   :  { %948 = shalt.err (!%p945_p4)
}
 0x297   :  { %s949_s12 = scalar_lea.hbm %s1202_s7, 16 }
 0x298   :  { %p950_p5 = scmp.ne.s32.totalorder %s1202_s7, %s949_s12  ;;  %p953_p6 = scmp.lt.u32.totalorder %s949_s12, %s1202_s7 }
 0x29a   :  { %p955_p7 = pnand %p953_p6, %p950_p5 }
 0x29c   :  { %958 = shalt.err (!%p955_p7)
}
 0x29d   :  { %754 = dma.vmem_to_hbm [thread:$0]  %s752_s8, 16, %s1202_s7, [#allocation4]  }
 0x29e   :  { %959 = dma.done.wait [#allocation4], 16  }
 0x29f   :  { %960 = vsyncadd [#allocation4], 4294967280 }
 0x2a0   :  { %758 = vsyncpa [#allocation4], 1 }

</bundles_post_ra>
